<compile_context>
chip_gen: v5e
topology: v5e:2x2
jax: 0.10.0
libtpu: 0.0.40
codegen_flags: <defaults>
</compile_context>

<pallas_src>
import math
import functools

import jax
import jax.numpy as jnp
from jax.experimental import pallas as pl
from jax.experimental.pallas import tpu as pltpu


def _round_up(x, m):
    return ((x + m - 1) // m) * m


def _divisor_tile(total, desired, step=128):
    """Largest multiple of `step` that divides `total` and is <= `desired`."""
    best = step
    d = step
    while d <= total:
        if total % d == 0 and d <= desired:
            best = d
        d += step
    return best


# ----------------------------- kernels --------------------------------------

def _mlp_resident_kernel(x_ref, w1_ref, b1_ref, w2_ref, b2_ref, o_ref):
    """relu(X @ W1 + b1) @ W2 + b2 with both weights fully VMEM-resident."""
    h = jnp.dot(x_ref[...], w1_ref[...], preferred_element_type=jnp.float32)
    h = jnp.maximum(h + b1_ref[...], 0.0)
    s = jnp.dot(h.astype(w2_ref.dtype), w2_ref[...],
                preferred_element_type=jnp.float32)
    o_ref[...] = (s + b2_ref[...]).astype(o_ref.dtype)


def _mlp_htiled_kernel(x_ref, w1_ref, b1_ref, w2_ref, b2_ref, o_ref, acc_ref):
    """One (batch-tile, H-tile) reduction step of the fused MLP."""
    hstep = pl.program_id(1)

    @pl.when(hstep == 0)
    def _():
        # Fold b2 into the accumulator init (saves an epilogue VPU pass).
        acc_ref[...] = jnp.broadcast_to(b2_ref[...], acc_ref.shape)

    # fc1 partial over this H tile: (bb, Dp) @ (Dp, bh) -> (bb, bh)
    h = jnp.dot(x_ref[...], w1_ref[...], preferred_element_type=jnp.float32)
    h = jnp.maximum(h + b1_ref[...], 0.0)
    # fc3 partial: (bb, bh) @ (bh, Cp) -> (bb, Cp), accumulated in f32.
    acc_ref[...] += jnp.dot(h.astype(w2_ref.dtype), w2_ref[...],
                            preferred_element_type=jnp.float32)

    @pl.when(hstep == pl.num_programs(1) - 1)
    def _():
        o_ref[...] = acc_ref[...].astype(o_ref.dtype)


# ------------------- one-time weight preparation (hoisted) ------------------

def prepare_mlp_params(w1, b1, w2, b2, compute_dtype=jnp.bfloat16):
    """Pad to 128-aligned sizes, cast to the MXU dtype and pre-transpose.

    Done ONCE at init (not per forward call). Zero padding is exact for this
    MLP: padded D columns contribute 0 to fc1, padded H units are ReLU(0)=0
    against zero W2 rows, padded C columns are sliced off after the kernel.
    """
    H, D = w1.shape
    C, _ = w2.shape
    Dp, Hp, Cp = _round_up(D, 128), _round_up(H, 128), _round_up(C, 128)
    w1t = jnp.pad(w1, ((0, Hp - H), (0, Dp - D))).astype(compute_dtype).T  # (Dp, Hp)
    w2t = jnp.pad(w2, ((0, Cp - C), (0, Hp - H))).astype(compute_dtype).T  # (Hp, Cp)
    b1p = jnp.pad(b1, (0, Hp - H)).reshape(1, Hp).astype(jnp.float32)
    b2p = jnp.pad(b2, (0, Cp - C)).reshape(1, Cp).astype(jnp.float32)
    return (jnp.asarray(w1t), b1p, jnp.asarray(w2t), b2p)


# ----------------------------- forward ---------------------------------------

@functools.partial(
    jax.jit,
    static_argnames=("n_out", "block_b", "block_h", "vmem_budget_bytes",
                     "force_path", "compute_dtype"))
def mlp_forward(x, params, *, n_out=None, block_b=None, block_h=512,
                vmem_budget_bytes=40 * 1024 * 1024, force_path=None,
                compute_dtype=jnp.bfloat16):
    """x: (B, D); params from prepare_mlp_params(); returns (B, n_out)."""
    w1t, b1p, w2t, b2p = params
    B, D = x.shape
    Dp, Hp = w1t.shape
    _, Cp = w2t.shape
    n_out = Cp if n_out is None else n_out

    out_dtype = x.dtype
    cdt = compute_dtype
    itemsize = jnp.dtype(cdt).itemsize
    out_itemsize = jnp.dtype(out_dtype).itemsize

    # ---- batch tile: small batches stay small; big batches get MXU-sized tiles
    if block_b is None:
        if B <= 256:
            block_b = _round_up(B, 8)
        elif B < 1024:
            block_b = 256
        else:
            block_b = 512
    assert block_b % 8 == 0
    Bp = _round_up(B, block_b)
    grid0 = Bp // block_b

    # Only the (cheap, batch-sized) activation is padded/cast per call.
    xp = jnp.pad(x, ((0, Bp - B), (0, Dp - D))).astype(cdt)

    weight_bytes = (Dp * Hp + Hp * Cp) * itemsize
    flops = 2 * Bp * Hp * Dp + 2 * Bp * Cp * Hp

    # VMEM footprint if both weights stay resident (double-buffered X / out
    # tiles, f32 hidden temp headroom).
    resident_need = (weight_bytes
                     + 2 * block_b * Dp * itemsize
                     + 2 * block_b * Cp * out_itemsize
                     + block_b * Hp * 4
                     + block_b * Cp * 4
                     + (Hp + Cp) * 4)
    use_resident = (force_path == "resident"
                    or (force_path is None and resident_need <= vmem_budget_bytes))

    if use_resident:
        vmem_limit = int(min(max(resident_need * 13 // 10 + (4 << 20), 32 << 20),
                             60 << 20))
        cost = pl.CostEstimate(
            flops=flops, transcendentals=0,
            bytes_accessed=(Bp * Dp * itemsize + weight_bytes
                            + (Hp + Cp) * 4 + Bp * Cp * out_itemsize))
        out = pl.pallas_call(
            _mlp_resident_kernel,
            out_shape=jax.ShapeDtypeStruct((Bp, Cp), out_dtype),
            grid_spec=pltpu.PrefetchScalarGridSpec(
                num_scalar_prefetch=0,
                grid=(grid0,),
                in_specs=[
                    pl.BlockSpec((block_b, Dp), lambda i: (i, 0)),  # X tile
                    pl.BlockSpec((Dp, Hp), lambda i: (0, 0)),       # W1 (resident)
                    pl.BlockSpec((1, Hp), lambda i: (0, 0)),        # b1
                    pl.BlockSpec((Hp, Cp), lambda i: (0, 0)),       # W2 (resident)
                    pl.BlockSpec((1, Cp), lambda i: (0, 0)),        # b2
                ],
                out_specs=pl.BlockSpec((block_b, Cp), lambda i: (i, 0)),
            ),
            compiler_params=pltpu.CompilerParams(
                dimension_semantics=("parallel",),
                vmem_limit_bytes=vmem_limit,
            ),
            cost_estimate=cost,
        )(xp, w1t, b1p, w2t, b2p)
    else:
        # H-tiled reduction path (weights too large for VMEM, e.g. v7x).
        blk_h = _divisor_tile(Hp, block_h)   # divisor of Hp -> no over-padding
        tiled_need = (2 * block_b * Dp * itemsize
                      + 2 * (Dp * blk_h + blk_h * Cp) * itemsize
                      + block_b * Cp * 4                      # f32 accumulator
                      + 2 * block_b * Cp * out_itemsize
                      + block_b * blk_h * 4
                      + (Hp + Cp) * 4)
        vmem_limit = int(min(max(tiled_need * 13 // 10 + (4 << 20), 32 << 20),
                             60 << 20))
        cost = pl.CostEstimate(
            flops=flops, transcendentals=0,
            # Weights are re-streamed once per batch tile on this path.
            bytes_accessed=(Bp * Dp * itemsize + grid0 * weight_bytes
                            + (Hp + Cp) * 4 + Bp * Cp * out_itemsize))
        out = pl.pallas_call(
            _mlp_htiled_kernel,
            out_shape=jax.ShapeDtypeStruct((Bp, Cp), out_dtype),
            grid_spec=pltpu.PrefetchScalarGridSpec(
                num_scalar_prefetch=0,
                grid=(grid0, Hp // blk_h),
                in_specs=[
                    pl.BlockSpec((block_b, Dp), lambda i, j: (i, 0)),  # X tile
                    pl.BlockSpec((Dp, blk_h), lambda i, j: (0, j)),    # W1 H-tile
                    pl.BlockSpec((1, blk_h), lambda i, j: (0, j)),     # b1 H-tile
                    pl.BlockSpec((blk_h, Cp), lambda i, j: (j, 0)),    # W2 H-tile
                    pl.BlockSpec((1, Cp), lambda i, j: (0, 0)),        # b2
                ],
                out_specs=pl.BlockSpec((block_b, Cp), lambda i, j: (i, 0)),
                scratch_shapes=[pltpu.VMEM((block_b, Cp), jnp.float32)],
            ),
            compiler_params=pltpu.CompilerParams(
                dimension_semantics=("parallel", "arbitrary"),
                vmem_limit_bytes=vmem_limit,
            ),
            cost_estimate=cost,
        )(xp, w1t, b1p, w2t, b2p)

    return out[:B, :n_out]


def init_mlp_params(key, H, C, D, dtype=jnp.float32):
    """Deterministic init matching the PyTorch module's uniform ranges."""
    k1, k2, k3, k4 = jax.random.split(key, 4)
    a1 = math.sqrt(6.0 / D)
    w1 = jax.random.uniform(k1, (H, D), dtype, minval=-a1, maxval=a1)
    b1lim = 1.0 / math.sqrt(D)
    b1 = jax.random.uniform(k2, (H,), dtype, minval=-b1lim, maxval=b1lim)
    a3 = math.sqrt(6.0 / H)
    w2 = jax.random.uniform(k3, (C, H), dtype, minval=-a3, maxval=a3)
    b3lim = 1.0 / math.sqrt(H)
    b2 = jax.random.uniform(k4, (C,), dtype, minval=-b3lim, maxval=b3lim)
    return w1, b1, w2, b2


if __name__ == "__main__":
    # Small shapes consistent with the module: batch=8, D=32, H=64, C=16.
    B, D, H, C = 8, 32, 64, 16

    key = jax.random.PRNGKey(0)
    kx, kp = jax.random.split(key)
    x = jax.random.normal(kx, (B, D), dtype=jnp.float32)
    w1, b1, w2, b2 = init_mlp_params(kp, H, C, D)

    # One-time weight prep (pad + bf16 cast + transpose), OUTSIDE the hot path.
    params = prepare_mlp_params(w1, b1, w2, b2)
    params = jax.tree_util.tree_map(jax.block_until_ready, params)

    # Default path (weights-resident here, since they trivially fit VMEM).
    out = jax.block_until_ready(mlp_forward(x, params, n_out=C))
    assert out.shape == (B, C)

    # Also exercise the H-tiled reduction path used when weights overflow VMEM.
    out_tiled = jax.block_until_ready(
        mlp_forward(x, params, n_out=C, force_path="tiled"))
    assert out_tiled.shape == (B, C)

    # Reference with the same bf16-operand / f32-accumulation recipe.
    bf = jnp.bfloat16
    h_ref = jnp.maximum(
        jnp.dot(x.astype(bf), w1.astype(bf).T, preferred_element_type=jnp.float32)
        + b1, 0.0)
    s_ref = jnp.dot(h_ref.astype(bf), w2.astype(bf).T,
                    preferred_element_type=jnp.float32) + b2
    assert jnp.allclose(out, s_ref, atol=1e-2, rtol=1e-2)
    assert jnp.allclose(out_tiled, s_ref, atol=1e-2, rtol=1e-2)

    # Loose sanity check against the full-f32 math of the original module.
    s_f32 = jnp.maximum(x @ w1.T + b1, 0.0) @ w2.T + b2
    assert jnp.allclose(out, s_f32, atol=1e-1, rtol=1e-1)

    print("KERNEL_OK")
</pallas_src>

<mosaic_0001>
module attributes {stable_mosaic.version = 11 : i64} {
  func.func @_mlp_resident_kernel(%arg0: i32, %arg1: memref<8x128xbf16, #tpu.memory_space<vmem>>, %arg2: memref<128x128xbf16, #tpu.memory_space<vmem>>, %arg3: memref<1x128xf32, #tpu.memory_space<vmem>>, %arg4: memref<128x128xbf16, #tpu.memory_space<vmem>>, %arg5: memref<1x128xf32, #tpu.memory_space<vmem>>, %arg6: memref<8x128xf32, #tpu.memory_space<vmem>>) attributes {dimension_semantics = [#tpu.dimension_semantics<parallel>], iteration_bounds = array<i64: 1>, scalar_prefetch = 0 : i64, scratch_operands = 0 : i64, tpu.core_type = #tpu.core_type<tc>, window_params = [{transform_indices = @transform_0, window_bounds = array<i64: 8, 128>}, {pipeline_mode = #tpu.pipeline_mode<synchronous>, transform_indices = @transform_1, window_bounds = array<i64: 128, 128>}, {pipeline_mode = #tpu.pipeline_mode<synchronous>, transform_indices = @transform_2, window_bounds = array<i64: 1, 128>}, {pipeline_mode = #tpu.pipeline_mode<synchronous>, transform_indices = @transform_3, window_bounds = array<i64: 128, 128>}, {pipeline_mode = #tpu.pipeline_mode<synchronous>, transform_indices = @transform_4, window_bounds = array<i64: 1, 128>}, {transform_indices = @transform_5, window_bounds = array<i64: 8, 128>}]} {
    %c0 = arith.constant 0 : index
    %c0_0 = arith.constant 0 : index
    %0 = vector.load %arg1[%c0, %c0_0] : memref<8x128xbf16, #tpu.memory_space<vmem>>, vector<8x128xbf16>
    %c0_1 = arith.constant 0 : index
    %c0_2 = arith.constant 0 : index
    %1 = vector.load %arg2[%c0_1, %c0_2] : memref<128x128xbf16, #tpu.memory_space<vmem>>, vector<128x128xbf16>
    %cst = arith.constant dense<0.000000e+00> : vector<8x128xf32>
    %2 = tpu.matmul %0, %1, %cst {dimension_numbers = #tpu.dot_dimension_numbers<[1], [0], [0], [1], [0, 0, 1, 1], [], []>} : vector<8x128xbf16>, vector<128x128xbf16>, vector<8x128xf32> -> vector<8x128xf32>
    %c0_3 = arith.constant 0 : index
    %c0_4 = arith.constant 0 : index
    %3 = vector.load %arg3[%c0_3, %c0_4] : memref<1x128xf32, #tpu.memory_space<vmem>>, vector<1x128xf32>
    %4 = vector.broadcast %3 : vector<1x128xf32> to vector<8x128xf32>
    %5 = arith.addf %2, %4 : vector<8x128xf32>
    %cst_5 = arith.constant 0.000000e+00 : f32
    %6 = vector.broadcast %cst_5 : f32 to vector<8x128xf32>
    %7 = arith.maximumf %5, %6 : vector<8x128xf32>
    %8 = arith.truncf %7 : vector<8x128xf32> to vector<8x128xbf16>
    %c0_6 = arith.constant 0 : index
    %c0_7 = arith.constant 0 : index
    %9 = vector.load %arg4[%c0_6, %c0_7] : memref<128x128xbf16, #tpu.memory_space<vmem>>, vector<128x128xbf16>
    %cst_8 = arith.constant dense<0.000000e+00> : vector<8x128xf32>
    %10 = tpu.matmul %8, %9, %cst_8 {dimension_numbers = #tpu.dot_dimension_numbers<[1], [0], [0], [1], [0, 0, 1, 1], [], []>} : vector<8x128xbf16>, vector<128x128xbf16>, vector<8x128xf32> -> vector<8x128xf32>
    %c0_9 = arith.constant 0 : index
    %c0_10 = arith.constant 0 : index
    %11 = vector.load %arg5[%c0_9, %c0_10] : memref<1x128xf32, #tpu.memory_space<vmem>>, vector<1x128xf32>
    %12 = vector.broadcast %11 : vector<1x128xf32> to vector<8x128xf32>
    %13 = arith.addf %10, %12 : vector<8x128xf32>
    %c0_11 = arith.constant 0 : index
    %c0_12 = arith.constant 0 : index
    %14 = vector.load %arg6[%c0_11, %c0_12] : memref<8x128xf32, #tpu.memory_space<vmem>>, vector<8x128xf32>
    tpu.vector_store %arg6[%c0_11, %c0_12], %13 {strides = array<i32>} : memref<8x128xf32, #tpu.memory_space<vmem>>, vector<8x128xf32>,
    return
  }
  func.func @transform_0(%arg0: i32) -> (i32, i32) {
    %c0_i32 = arith.constant 0 : i32
    %c0_i32_0 = arith.constant 0 : i32
    return %arg0, %c0_i32 : i32, i32
  }
  func.func @transform_1(%arg0: i32) -> (i32, i32) {
    %c0_i32 = arith.constant 0 : i32
    %c0_i32_0 = arith.constant 0 : i32
    %c0_i32_1 = arith.constant 0 : i32
    return %c0_i32, %c0_i32_0 : i32, i32
  }
  func.func @transform_2(%arg0: i32) -> (i32, i32) {
    %c0_i32 = arith.constant 0 : i32
    %c0_i32_0 = arith.constant 0 : i32
    %c0_i32_1 = arith.constant 0 : i32
    return %c0_i32, %c0_i32_0 : i32, i32
  }
  func.func @transform_3(%arg0: i32) -> (i32, i32) {
    %c0_i32 = arith.constant 0 : i32
    %c0_i32_0 = arith.constant 0 : i32
    %c0_i32_1 = arith.constant 0 : i32
    return %c0_i32, %c0_i32_0 : i32, i32
  }
  func.func @transform_4(%arg0: i32) -> (i32, i32) {
    %c0_i32 = arith.constant 0 : i32
    %c0_i32_0 = arith.constant 0 : i32
    %c0_i32_1 = arith.constant 0 : i32
    return %c0_i32, %c0_i32_0 : i32, i32
  }
  func.func @transform_5(%arg0: i32) -> (i32, i32) {
    %c0_i32 = arith.constant 0 : i32
    %c0_i32_0 = arith.constant 0 : i32
    return %arg0, %c0_i32 : i32, i32
  }
}

</mosaic_0001>

<bundles_post_ra>
// kernel: mlp_forward.1
= control target key start
LH: loop header
LB: loop body
LE: loop exit
PB: predicated region body
PF: predicated region fallthrough
CT: control target
= control target key end

     0   :  { %10 = vsyncpa [#allocation3], 0  ;;  %s455_s0 = inlined_call_operand.vmem [shape: bf16[8,128], index: 0, kind: input, shape index: {}]   ;;  %s456_s1 = inlined_call_operand.hbm [shape: bf16[128,128], index: 1, kind: input, shape index: {}]   ;;  %s457_s2 = inlined_call_operand.vmem [shape: f32[1,128], index: 2, kind: input, shape index: {}]   ;;  %s458_s3 = inlined_call_operand.hbm [shape: bf16[128,128], index: 3, kind: input, shape index: {}]   ;;  %s459_s4 = inlined_call_operand.vmem [shape: f32[1,128], index: 4, kind: input, shape index: {}]   ;;  %s460_s5 = inlined_call_operand.hbm [shape: f32[8,128], index: 5, kind: output, shape index: {}]  }
   0x1   :  { %11 = vsyncpa [#allocation6], 0 }
   0x2   :  { %12 = vsyncpa [#allocation4], 0  ;;  %s19_s20 = sshll.u32 %s456_s1, 4  ;;  %s402_s21 = smov [#allocation2]   ;;  %s20_s20 = int_to_ptr.hbm [resolvable:$true] %s19_s20 }
   0x3   :  { %s21_s22 = sshll.u32 %s402_s21, 4  ;;  %s34_s25 = sshll.u32 %s458_s3, 4  ;;  %s22_s22 = int_to_ptr.vmem [resolvable:$true] %s21_s22  ;;  %s35_s25 = int_to_ptr.hbm [resolvable:$true] %s34_s25 }
   0x4   :  { %s403_s26 = smov 64   ;;  %s404_s27 = smov 4  }
   0x5   :  { %27 = dma.hbm_to_vmem [thread:$0]  %s20_s20, 1024, %s22_s22, [#allocation3], %s403_s26, %s403_s26, %s404_s27  }
   0x6   :  { %s405_s28 = smov [#allocation5]  }
   0x7   :  { %s36_s29 = sshll.u32 %s405_s28, 4  ;;  %s37_s29 = int_to_ptr.vmem [resolvable:$true] %s36_s29 }
   0x8   :  { %42 = dma.hbm_to_vmem [thread:$0]  %s35_s25, 1024, %s37_s29, [#allocation6], %s403_s26, %s403_s26, %s404_s27  }
   0x9   :  { %396 = dma.done.wait [#allocation3], 1024  }
   0xa   :  { %397 = vsyncadd [#allocation3], 4294966272 }
   0xb   :  { %398 = dma.done.wait [#allocation6], 1024  }
   0xc   :  { %399 = vsyncadd [#allocation6], 4294966272  ;;  %v308_v0 = vld [vmem:[#allocation2 + $0x38] sm:$0xff]  ;;  %v307_v1 = vld [vmem:[#allocation2 + $0x30] sm:$0xff]  ;;  %s226_s12 = sshll.u32 %s460_s5, 4  ;;  %s227_s12 = int_to_ptr.hbm [resolvable:$true] %s226_s12 }
   0xd   :  { %122 = vmatpush.bf16.msra.mxu0 %v308_v0  ;;  %v316_v2 = vld [vmem:[#allocation5 + $0x38] sm:$0xff]  ;;  %v315_v3 = vld [vmem:[#allocation5 + $0x30] sm:$0xff]  ;;  %v306_v4 = vld [vmem:[#allocation2 + $0x28] sm:$0xff] }
   0xe   :  { %205 = vmatpush.bf16.msra.mxu1 %v316_v2  ;;  %v314_v5 = vld [vmem:[#allocation5 + $0x28] sm:$0xff]  ;;  %v305_v6 = vld [vmem:[#allocation2 + $0x20] sm:$0xff]  ;;  %v304_v8 = vld [vmem:[#allocation2 + $0x18] sm:$0xff] }
   0xf   :  { %v313_v7 = vld [vmem:[#allocation5 + $0x20] sm:$0xff]  ;;  %v312_v9 = vld [vmem:[#allocation5 + $0x18] sm:$0xff]  ;;  %v303_v10 = vld [vmem:[#allocation2 + $0x10] sm:$0xff] }
  0x10   :  { %v311_v11 = vld [vmem:[#allocation5 + $0x10] sm:$0xff]  ;;  %v302_v12 = vld [vmem:[#allocation2 + $0x8] sm:$0xff]  ;;  %v301_v13 = vld [vmem:[#allocation2] sm:$0xff] }
  0x11   :  { %123 = vmatpush.bf16.msra.mxu0 %v307_v1  ;;  %v53_v14 = vld [vmem:[%s455_s0] sm:$0xf]  ;;  %v310_v15 = vld [vmem:[#allocation5 + $0x8] sm:$0xff]  ;;  %s406_s0 = smov [#allocation7]  }
  0x12   :  { %206 = vmatpush.bf16.msra.mxu1 %v315_v3  ;;  %v309_v16 = vld [vmem:[#allocation5] sm:$0xff]  ;;  %s224_s9 = sshll.u32 %s406_s0, 4  ;;  %s225_s9 = int_to_ptr.vmem [resolvable:$true] %s224_s9 }
  0x13   :  { %v322_v17 = vld [vmem:[%s457_s2] ss:$0 sm:$0xff] }
  0x14   :  { %v323_v23 = vld [vmem:[%s459_s4] ss:$0 sm:$0xff] }
  0x15   :  { %124 = vmatpush.bf16.msra.mxu0 %v306_v4 }
  0x16   :  { %207 = vmatpush.bf16.msra.mxu1 %v314_v5 }
  0x19   :  { %125 = vmatpush.bf16.msra.mxu0 %v305_v6 }
  0x1a   :  { %208 = vmatpush.bf16.msra.mxu1 %v313_v7 }
  0x1d   :  { %126 = vmatpush.bf16.msra.mxu0 %v304_v8 }
  0x1e   :  { %209 = vmatpush.bf16.msra.mxu1 %v312_v9 }
  0x21   :  { %127 = vmatpush.bf16.msra.mxu0 %v303_v10 }
  0x22   :  { %210 = vmatpush.bf16.msra.mxu1 %v311_v11 }
  0x25   :  { %128 = vmatpush.bf16.msra.mxu0 %v302_v12 }
  0x26   :  { %211 = vmatpush.bf16.msra.mxu1 %v310_v15 }
  0x29   :  { %129 = vmatpush.bf16.msra.mxu0 %v301_v13 }
  0x2a   :  { %212 = vmatpush.bf16.msra.mxu1 %v309_v16 }
  0x2c   :  { %130 = vmatmul.bf16.vlgmr.msra.gmra.mxu0 %v53_v14 }
  0xa9   :  { %v131_v18 = vpop.f32.mrf.mxu0 }
  0xaa   :  { %v132_v19 = vadd.f32 %v322_v17, %v131_v18 }
  0xac   :  { %v135_v20 = vmax.f32 %v132_v19, 0.0 }
  0xae   :  { %v136_v21 = vpack.c.bf16 %v135_v20, %v135_v20 }
  0xb0   :  { %213 = vmatmul.bf16.vlgmr.msra.gmra.mxu1 %v136_v21 }
  0xb1   :  { %v133_v22 = vpop.f32.mrf.mxu0 }
 0x12d   :  { %v214_v24 = vpop.f32.mrf.mxu1 }
 0x12e   :  { %v215_v25 = vadd.f32 %v323_v23, %v214_v24 }
 0x130   :  { %218 = vst [vmem:[#allocation7] sm:$0xff] %v215_v25 }
 0x131   :  { %229 = dma.vmem_to_hbm [thread:$0]  %s225_s9, 128, %s227_s12, [#allocation4]  }
 0x135   :  { %v216_v26 = vpop.f32.mrf.mxu1 }
 0x136   :  { %400 = dma.done.wait [#allocation4], 128  }
 0x137   :  { %401 = vsyncadd [#allocation4], 4294967168 }
 0x138   :  { %234 = vsyncpa [#allocation3], 1 }
 0x139   :  { %235 = vsyncpa [#allocation6], 1 }
 0x13a   :  { %236 = vsyncpa [#allocation4], 1 }

</bundles_post_ra>
